<compile_context>
chip_gen: v5e
topology: v5e:2x2
jax: 0.10.0
libtpu: 0.0.40
codegen_flags: <defaults>
</compile_context>

<pallas_src>
import jax
import jax.numpy as jnp
import numpy as np
from jax.experimental import pallas as pl
from jax.experimental.pallas import tpu as pltpu

# -------------------- problem / module configuration --------------------
N_JOINTS = 4          # J
ROT_DIM = 6           # per-joint 6D rotation
POS_DIM = 3           # per-joint 3D position
TRANS_DIM = 3         # global translation
FEAT_DIM = N_JOINTS * ROT_DIM + N_JOINTS * POS_DIM + TRANS_DIM  # D = 39
N_GROUPS = 2 * N_JOINTS + 1                                     # 9 L2 groups


# -------------------- glue: recover_from_vector (reference only) --------------------
def recover_from_vector(x):
    """Split packed (B, T, D) vector into rotation / position / trans."""
    B, T, _ = x.shape
    o0 = N_JOINTS * ROT_DIM
    o1 = o0 + N_JOINTS * POS_DIM
    return {
        "rotation": x[..., :o0].reshape(B, T, N_JOINTS, ROT_DIM),
        "position": x[..., o0:o1].reshape(B, T, N_JOINTS, POS_DIM),
        "trans": x[..., o1:o1 + TRANS_DIM],
    }


def _group_matrix(rot_scale, pos_scale, trans_scale):
    """(D, n_groups) indicator matrix with group weights folded in as w^2.

    w*sqrt(sum d^2) == sqrt(w^2 * sum d^2) for w >= 0, so folding w^2 lets a
    single matmul produce already-weighted group sums of squares.
    """
    assert rot_scale >= 0 and pos_scale >= 0 and trans_scale >= 0, \
        "weight folding assumes non-negative loss scales"
    g = np.zeros((FEAT_DIM, N_GROUPS), np.float32)
    off, col = 0, 0
    for _ in range(N_JOINTS):                       # per-joint 6D rotation
        g[off:off + ROT_DIM, col] = (rot_scale / N_JOINTS) ** 2
        off += ROT_DIM
        col += 1
    for _ in range(N_JOINTS):                       # per-joint 3D position
        g[off:off + POS_DIM, col] = (pos_scale / N_JOINTS) ** 2
        off += POS_DIM
        col += 1
    g[off:off + TRANS_DIM, col] = trans_scale ** 2  # global translation
    assert off + TRANS_DIM == FEAT_DIM
    return jnp.asarray(g)


# -------------------- Pallas kernel --------------------
def _weighted_mse_kernel(g_ref, x_ref, t_ref, mask_ref, sum_ref, cnt_ref,
                         acc_sc, msk_sc):
    # grid = (T-chunks [parallel], B tiles [parallel], T tiles [arbitrary]).
    ti = pl.program_id(2)

    @pl.when(ti == 0)
    def _init():
        acc_sc[...] = jnp.zeros_like(acc_sc)
        msk_sc[...] = jnp.zeros_like(msk_sc)

    tb, tt, d = x_ref.shape
    diff = x_ref[...].astype(jnp.float32) - t_ref[...].astype(jnp.float32)
    d2 = (diff * diff).reshape(tb * tt, d)

    # One MXU contraction replaces the nine tiny cross-lane group reductions.
    # g_ref carries the per-group weights squared, so gsum is already weighted.
    gsum = jnp.dot(d2, g_ref[...], preferred_element_type=jnp.float32)
    gsum = gsum.reshape(tb, tt, g_ref.shape[1])
    per_t = jnp.sum(jnp.sqrt(gsum), axis=-1)          # (tb, tt)

    mask = mask_ref[...].astype(jnp.float32)
    # jnp.where (not plain multiply) so garbage from ragged / out-of-bounds
    # input tiles (which can be NaN/Inf) never reaches the accumulator.
    acc_sc[...] += jnp.where(mask != 0.0, per_t * mask, 0.0)
    msk_sc[...] += mask

    @pl.when(ti == pl.num_programs(2) - 1)
    def _finalize():
        # Single cross-lane reduce per (chunk, B-tile); partial sums/counts
        # are combined (and divided) in the wrapper.
        sum_ref[...] = jnp.sum(acc_sc[...], axis=1, keepdims=True)
        cnt_ref[...] = jnp.sum(msk_sc[...], axis=1, keepdims=True)


# -------------------- wrapper --------------------
def _round_up(a, m):
    return ((a + m - 1) // m) * m


def _default_t_tile():
    vmem = 64 << 20                      # conservative fallback (v7x per-TC VMEM)
    try:
        vmem = int(getattr(pltpu.get_tpu_info(), "vmem_capacity_bytes", vmem))
    except Exception:
        pass
    # 2048 on 128-MiB-VMEM parts (v5e/v6e), 1024 on v7x (64 MiB).
    return 2048 if vmem >= (96 << 20) else 1024


def weighted_mse_loss(x, target, padding_mask, rot_scale=1.0, pos_scale=1.0,
                      trans_scale=1.0, t_tile=None, b_tile=8):
    B, T, D = x.shape
    assert D == FEAT_DIM
    assert target.shape == x.shape and padding_mask.shape == (B, T)

    if t_tile is None:
        t_tile = _default_t_tile()
    assert t_tile % 128 == 0

    # ---- tile / grid selection.  x/target are NOT padded; only the cheap
    #      (B, T) mask is zero-padded so ragged tiles read zeros there. ----
    tile_t = min(t_tile, _round_up(T, 8))
    nt_total = pl.cdiv(T, tile_t)
    tile_b = b_tile if B > b_tile else B
    n_b = pl.cdiv(B, tile_b)
    # Give the parallel grid >= 2 steps for v7x's two TensorCores: when there
    # is a single B tile, split T into 2 parallel outer chunks whose partial
    # (sum, count) outputs are combined below.
    n_tc = 2 if (n_b == 1 and nt_total >= 2) else 1
    n_t = pl.cdiv(nt_total, n_tc)

    Bp = n_b * tile_b
    Tp = n_tc * n_t * tile_t

    mask = padding_mask.astype(jnp.float32)
    if (Bp, Tp) != (B, T):
        mask = jnp.pad(mask, ((0, Bp - B), (0, Tp - T)))

    g_mat = _group_matrix(float(rot_scale), float(pos_scale), float(trans_scale))

    # Clamp the T block index for x/target so a chunk never requests a block
    # starting fully past T (the zero-padded mask nulls its contribution).
    def _tblk(c, ti):
        return jnp.minimum(c * n_t + ti, nt_total - 1)

    x_spec = pl.BlockSpec((tile_b, tile_t, D),
                          lambda c, bi, ti: (bi, _tblk(c, ti), 0))
    m_spec = pl.BlockSpec((tile_b, tile_t),
                          lambda c, bi, ti: (bi, c * n_t + ti))
    g_spec = pl.BlockSpec((FEAT_DIM, N_GROUPS), lambda c, bi, ti: (0, 0))
    o_spec = pl.BlockSpec((None, tile_b, 1), lambda c, bi, ti: (c, bi, 0))

    cost = pl.CostEstimate(
        flops=int(B) * int(T) * (3 * D + 2 * D * N_GROUPS + 2 * N_GROUPS + 4),
        transcendentals=int(B) * int(T) * N_GROUPS,
        bytes_accessed=4 * (2 * int(B) * int(T) * D + int(B) * int(T) + 4 * int(B)),
    )

    sums, cnts = pl.pallas_call(
        _weighted_mse_kernel,
        out_shape=(jax.ShapeDtypeStruct((n_tc, Bp, 1), jnp.float32),
                   jax.ShapeDtypeStruct((n_tc, Bp, 1), jnp.float32)),
        grid=(n_tc, n_b, n_t),
        in_specs=[g_spec, x_spec, x_spec, m_spec],
        out_specs=(o_spec, o_spec),
        scratch_shapes=[pltpu.VMEM((tile_b, tile_t), jnp.float32),   # masked sums
                        pltpu.VMEM((tile_b, tile_t), jnp.float32)],  # mask counts
        compiler_params=pltpu.CompilerParams(
            dimension_semantics=("parallel", "parallel", "arbitrary"),
            vmem_limit_bytes=48 * 1024 * 1024),
        cost_estimate=cost,
    )(g_mat, x, target, mask)

    total = jnp.sum(sums, axis=0)[:B, 0]
    count = jnp.sum(cnts, axis=0)[:B, 0]
    # All-zero mask rows give inf/NaN, exactly like the PyTorch reference.
    return total / count


# -------------------- pure-JAX reference (correctness check) --------------------
def _ref_loss(x, target, mask, rot_scale=1.0, pos_scale=1.0, trans_scale=1.0):
    def sum_flat(t):
        return jnp.sum(t, axis=tuple(range(1, t.ndim)))

    def masked_l2(a, b, m):
        l2 = jnp.linalg.norm(a - b, axis=-1)
        if l2.ndim > 2:
            l2 = jnp.mean(l2, axis=tuple(range(2, l2.ndim)))
        return sum_flat(l2 * m) / sum_flat(m)

    pred = recover_from_vector(x)
    gt = recover_from_vector(target)
    return (rot_scale * masked_l2(pred["rotation"], gt["rotation"], mask)
            + pos_scale * masked_l2(pred["position"], gt["position"], mask)
            + trans_scale * masked_l2(pred["trans"], gt["trans"], mask))


if __name__ == "__main__":
    key = jax.random.PRNGKey(0)

    # --- 1. small single-tile case ---
    B, T = 2, 8
    k1, k2, k3, k4, key = jax.random.split(key, 5)
    x = jax.random.normal(k1, (B, T, FEAT_DIM), jnp.float32)
    tgt = jax.random.normal(k2, (B, T, FEAT_DIM), jnp.float32)
    valid = jnp.array([T, T - 2])
    mask = (jnp.arange(T)[None, :] < valid[:, None]).astype(jnp.float32)
    out = jax.block_until_ready(weighted_mse_loss(x, tgt, mask))
    np.testing.assert_allclose(np.asarray(out),
                               np.asarray(_ref_loss(x, tgt, mask)),
                               rtol=1e-5, atol=1e-5)

    # --- 2. B tiling + ragged (unpadded) T/B tiles, padded mask only ---
    B2, T2 = 10, 300
    x2 = jax.random.normal(k3, (B2, T2, FEAT_DIM), jnp.float32)
    t2 = jax.random.normal(k4, (B2, T2, FEAT_DIM), jnp.float32)
    valid2 = jnp.arange(B2) * 27 % T2 + 13
    mask2 = (jnp.arange(T2)[None, :] < valid2[:, None]).astype(jnp.float32)
    out2 = jax.block_until_ready(
        weighted_mse_loss(x2, t2, mask2, t_tile=128, b_tile=8))
    np.testing.assert_allclose(np.asarray(out2),
                               np.asarray(_ref_loss(x2, t2, mask2)),
                               rtol=1e-4, atol=1e-4)

    # --- 3. single B tile -> 2 parallel T chunks; non-default scales
    #        (exercises the w^2 weight fold and partial-sum combination) ---
    k5, k6, key = jax.random.split(key, 3)
    B3, T3 = 2, 300
    x3 = jax.random.normal(k5, (B3, T3, FEAT_DIM), jnp.float32)
    t3 = jax.random.normal(k6, (B3, T3, FEAT_DIM), jnp.float32)
    valid3 = jnp.array([T3, T3 - 123])
    mask3 = (jnp.arange(T3)[None, :] < valid3[:, None]).astype(jnp.float32)
    scales = dict(rot_scale=0.5, pos_scale=2.0, trans_scale=1.5)
    out3 = jax.block_until_ready(
        weighted_mse_loss(x3, t3, mask3, t_tile=128, b_tile=8, **scales))
    np.testing.assert_allclose(np.asarray(out3),
                               np.asarray(_ref_loss(x3, t3, mask3, **scales)),
                               rtol=1e-4, atol=1e-4)

    print("KERNEL_OK")
</pallas_src>

<mosaic_0001>
module attributes {stable_mosaic.version = 11 : i64} {
  func.func @_weighted_mse_kernel(%arg0: i32, %arg1: i32, %arg2: i32, %arg3: memref<39x9xf32, #tpu.memory_space<vmem>>, %arg4: memref<2x8x39xf32, #tpu.memory_space<vmem>>, %arg5: memref<2x8x39xf32, #tpu.memory_space<vmem>>, %arg6: memref<2x8xf32, #tpu.memory_space<vmem>>, %arg7: memref<1x2x1xf32, #tpu.memory_space<vmem>>, %arg8: memref<1x2x1xf32, #tpu.memory_space<vmem>>, %arg9: memref<2x8xf32, #tpu.memory_space<vmem>>, %arg10: memref<2x8xf32, #tpu.memory_space<vmem>>) attributes {dimension_semantics = [#tpu.dimension_semantics<parallel>, #tpu.dimension_semantics<parallel>, #tpu.dimension_semantics<arbitrary>], iteration_bounds = array<i64: 1, 1, 1>, scalar_prefetch = 0 : i64, scratch_operands = 2 : i64, tpu.core_type = #tpu.core_type<tc>, window_params = [{pipeline_mode = #tpu.pipeline_mode<synchronous>, transform_indices = @transform_0, window_bounds = array<i64: 39, 9>}, {transform_indices = @transform_1, window_bounds = array<i64: 2, 8, 39>}, {transform_indices = @transform_2, window_bounds = array<i64: 2, 8, 39>}, {transform_indices = @transform_3, window_bounds = array<i64: 2, 8>}, {transform_indices = @transform_4, window_bounds = array<i64: 1, 2, 1>}, {transform_indices = @transform_5, window_bounds = array<i64: 1, 2, 1>}]} {
    %c0_i32 = arith.constant 0 : i32
    %0 = arith.cmpi eq, %arg2, %c0_i32 : i32
    %1 = arith.extui %0 : i1 to i32
    %c0_i32_0 = arith.constant 0 : i32
    %2 = arith.cmpi ne, %1, %c0_i32_0 : i32
    scf.if %2 {
      %cst_23 = arith.constant 0.000000e+00 : f32
      %28 = vector.broadcast %cst_23 : f32 to vector<2x8xf32>
      %c0_24 = arith.constant 0 : index
      %c0_25 = arith.constant 0 : index
      %29 = vector.load %arg9[%c0_24, %c0_25] : memref<2x8xf32, #tpu.memory_space<vmem>>, vector<2x8xf32>
      tpu.vector_store %arg9[%c0_24, %c0_25], %28 {strides = array<i32>} : memref<2x8xf32, #tpu.memory_space<vmem>>, vector<2x8xf32>,
      %cst_26 = arith.constant 0.000000e+00 : f32
      %30 = vector.broadcast %cst_26 : f32 to vector<2x8xf32>
      %c0_27 = arith.constant 0 : index
      %c0_28 = arith.constant 0 : index
      %31 = vector.load %arg10[%c0_27, %c0_28] : memref<2x8xf32, #tpu.memory_space<vmem>>, vector<2x8xf32>
      tpu.vector_store %arg10[%c0_27, %c0_28], %30 {strides = array<i32>} : memref<2x8xf32, #tpu.memory_space<vmem>>, vector<2x8xf32>,
    } else {
    }
    %c0 = arith.constant 0 : index
    %c0_1 = arith.constant 0 : index
    %c0_2 = arith.constant 0 : index
    %3 = vector.load %arg4[%c0, %c0_1, %c0_2] : memref<2x8x39xf32, #tpu.memory_space<vmem>>, vector<2x8x39xf32>
    %c0_3 = arith.constant 0 : index
    %c0_4 = arith.constant 0 : index
    %c0_5 = arith.constant 0 : index
    %4 = vector.load %arg5[%c0_3, %c0_4, %c0_5] : memref<2x8x39xf32, #tpu.memory_space<vmem>>, vector<2x8x39xf32>
    %5 = arith.subf %3, %4 : vector<2x8x39xf32>
    %6 = arith.mulf %5, %5 : vector<2x8x39xf32>
    %7 = vector.shape_cast %6 : vector<2x8x39xf32> to vector<16x39xf32>
    %c0_6 = arith.constant 0 : index
    %c0_7 = arith.constant 0 : index
    %8 = vector.load %arg3[%c0_6, %c0_7] : memref<39x9xf32, #tpu.memory_space<vmem>>, vector<39x9xf32>
    %cst = arith.constant dense<0.000000e+00> : vector<16x9xf32>
    %9 = tpu.matmul %7, %8, %cst {dimension_numbers = #tpu.dot_dimension_numbers<[1], [0], [0], [1], [0, 0, 1, 1], [], []>} : vector<16x39xf32>, vector<39x9xf32>, vector<16x9xf32> -> vector<16x9xf32>
    %10 = vector.shape_cast %9 : vector<16x9xf32> to vector<2x8x9xf32>
    %11 = math.sqrt %10 : vector<2x8x9xf32>
    %cst_8 = arith.constant dense<0.000000e+00> : vector<2x8xf32>
    %12 = vector.multi_reduction <add>, %11, %cst_8 [2] : vector<2x8x9xf32> to vector<2x8xf32>
    %c0_9 = arith.constant 0 : index
    %c0_10 = arith.constant 0 : index
    %13 = vector.load %arg6[%c0_9, %c0_10] : memref<2x8xf32, #tpu.memory_space<vmem>>, vector<2x8xf32>
    %c0_11 = arith.constant 0 : index
    %c0_12 = arith.constant 0 : index
    %14 = vector.load %arg9[%c0_11, %c0_12] : memref<2x8xf32, #tpu.memory_space<vmem>>, vector<2x8xf32>
    %cst_13 = arith.constant 0.000000e+00 : f32
    %15 = vector.broadcast %cst_13 : f32 to vector<2x8xf32>
    %16 = arith.cmpf one, %13, %15 : vector<2x8xf32>
    %17 = arith.mulf %12, %13 : vector<2x8xf32>
    %cst_14 = arith.constant 0.000000e+00 : f32
    %18 = vector.broadcast %cst_14 : f32 to vector<2x8xf32>
    %19 = arith.select %16, %17, %18 : vector<2x8xi1>, vector<2x8xf32>
    %20 = arith.addf %14, %19 : vector<2x8xf32>
    %c0_15 = arith.constant 0 : index
    %c0_16 = arith.constant 0 : index
    %21 = vector.load %arg9[%c0_15, %c0_16] : memref<2x8xf32, #tpu.memory_space<vmem>>, vector<2x8xf32>
    tpu.vector_store %arg9[%c0_15, %c0_16], %20 {strides = array<i32>} : memref<2x8xf32, #tpu.memory_space<vmem>>, vector<2x8xf32>,
    %c0_17 = arith.constant 0 : index
    %c0_18 = arith.constant 0 : index
    %22 = vector.load %arg10[%c0_17, %c0_18] : memref<2x8xf32, #tpu.memory_space<vmem>>, vector<2x8xf32>
    %23 = arith.addf %22, %13 : vector<2x8xf32>
    %c0_19 = arith.constant 0 : index
    %c0_20 = arith.constant 0 : index
    %24 = vector.load %arg10[%c0_19, %c0_20] : memref<2x8xf32, #tpu.memory_space<vmem>>, vector<2x8xf32>
    tpu.vector_store %arg10[%c0_19, %c0_20], %23 {strides = array<i32>} : memref<2x8xf32, #tpu.memory_space<vmem>>, vector<2x8xf32>,
    %c0_i32_21 = arith.constant 0 : i32
    %25 = arith.cmpi eq, %arg2, %c0_i32_21 : i32
    %26 = arith.extui %25 : i1 to i32
    %c0_i32_22 = arith.constant 0 : i32
    %27 = arith.cmpi ne, %26, %c0_i32_22 : i32
    scf.if %27 {
      %c0_23 = arith.constant 0 : index
      %c0_24 = arith.constant 0 : index
      %28 = vector.load %arg9[%c0_23, %c0_24] : memref<2x8xf32, #tpu.memory_space<vmem>>, vector<2x8xf32>
      %cst_25 = arith.constant dense<0.000000e+00> : vector<2xf32>
      %29 = vector.multi_reduction <add>, %28, %cst_25 [1] : vector<2x8xf32> to vector<2xf32>
      %30 = vector.shape_cast %29 : vector<2xf32> to vector<2x1xf32>
      %c0_26 = arith.constant 0 : index
      %c0_27 = arith.constant 0 : index
      %c0_28 = arith.constant 0 : index
      %31 = vector.load %arg7[%c0_26, %c0_27, %c0_28] : memref<1x2x1xf32, #tpu.memory_space<vmem>>, vector<1x2x1xf32>
      %32 = vector.shape_cast %31 : vector<1x2x1xf32> to vector<2x1xf32>
      %33 = vector.shape_cast %30 : vector<2x1xf32> to vector<1x2x1xf32>
      tpu.vector_store %arg7[%c0_26, %c0_27, %c0_28], %33 {strides = array<i32>} : memref<1x2x1xf32, #tpu.memory_space<vmem>>, vector<1x2x1xf32>,
      %c0_29 = arith.constant 0 : index
      %c0_30 = arith.constant 0 : index
      %34 = vector.load %arg10[%c0_29, %c0_30] : memref<2x8xf32, #tpu.memory_space<vmem>>, vector<2x8xf32>
      %cst_31 = arith.constant dense<0.000000e+00> : vector<2xf32>
      %35 = vector.multi_reduction <add>, %34, %cst_31 [1] : vector<2x8xf32> to vector<2xf32>
      %36 = vector.shape_cast %35 : vector<2xf32> to vector<2x1xf32>
      %c0_32 = arith.constant 0 : index
      %c0_33 = arith.constant 0 : index
      %c0_34 = arith.constant 0 : index
      %37 = vector.load %arg8[%c0_32, %c0_33, %c0_34] : memref<1x2x1xf32, #tpu.memory_space<vmem>>, vector<1x2x1xf32>
      %38 = vector.shape_cast %37 : vector<1x2x1xf32> to vector<2x1xf32>
      %39 = vector.shape_cast %36 : vector<2x1xf32> to vector<1x2x1xf32>
      tpu.vector_store %arg8[%c0_32, %c0_33, %c0_34], %39 {strides = array<i32>} : memref<1x2x1xf32, #tpu.memory_space<vmem>>, vector<1x2x1xf32>,
    } else {
    }
    return
  }
  func.func @transform_0(%arg0: i32, %arg1: i32, %arg2: i32) -> (i32, i32) {
    %c0_i32 = arith.constant 0 : i32
    %c0_i32_0 = arith.constant 0 : i32
    %c0_i32_1 = arith.constant 0 : i32
    return %c0_i32, %c0_i32_0 : i32, i32
  }
  func.func @transform_1(%arg0: i32, %arg1: i32, %arg2: i32) -> (i32, i32, i32) {
    %c1_i32 = arith.constant 1 : i32
    %0 = arith.muli %arg0, %c1_i32 : i32
    %1 = arith.addi %0, %arg2 : i32
    %c0_i32 = arith.constant 0 : i32
    %2 = arith.minsi %1, %c0_i32 : i32
    %c0_i32_0 = arith.constant 0 : i32
    %c0_i32_1 = arith.constant 0 : i32
    return %arg1, %2, %c0_i32_0 : i32, i32, i32
  }
  func.func @transform_2(%arg0: i32, %arg1: i32, %arg2: i32) -> (i32, i32, i32) {
    %c1_i32 = arith.constant 1 : i32
    %0 = arith.muli %arg0, %c1_i32 : i32
    %1 = arith.addi %0, %arg2 : i32
    %c0_i32 = arith.constant 0 : i32
    %2 = arith.minsi %1, %c0_i32 : i32
    %c0_i32_0 = arith.constant 0 : i32
    %c0_i32_1 = arith.constant 0 : i32
    return %arg1, %2, %c0_i32_0 : i32, i32, i32
  }
  func.func @transform_3(%arg0: i32, %arg1: i32, %arg2: i32) -> (i32, i32) {
    %c1_i32 = arith.constant 1 : i32
    %0 = arith.muli %arg0, %c1_i32 : i32
    %1 = arith.addi %0, %arg2 : i32
    %c0_i32 = arith.constant 0 : i32
    return %arg1, %1 : i32, i32
  }
  func.func @transform_4(%arg0: i32, %arg1: i32, %arg2: i32) -> (i32, i32, i32) {
    %c0_i32 = arith.constant 0 : i32
    %c0_i32_0 = arith.constant 0 : i32
    return %arg0, %arg1, %c0_i32 : i32, i32, i32
  }
  func.func @transform_5(%arg0: i32, %arg1: i32, %arg2: i32) -> (i32, i32, i32) {
    %c0_i32 = arith.constant 0 : i32
    %c0_i32_0 = arith.constant 0 : i32
    return %arg0, %arg1, %c0_i32 : i32, i32, i32
  }
}

</mosaic_0001>

<bundles_post_ra>
// kernel: tpu_custom_call.1
= control target key start
LH: loop header
LB: loop body
LE: loop exit
PB: predicated region body
PF: predicated region fallthrough
CT: control target
= control target key end

     0   :  { %vm117_vm0 = vcmask 1046528   ;;  %vm110_vm1 = vcmask 318464   ;;  %v180_v13 = vlaneseq  ;;  %vm94_vm2 = vcmask 58368   ;;  %s358_s0 = inlined_call_operand.vmem [shape: f32[39,9], index: 0, kind: input, shape index: {}]   ;;  %s359_s1 = inlined_call_operand.vmem [shape: f32[2,8,39], index: 1, kind: input, shape index: {}]   ;;  %s360_s2 = inlined_call_operand.vmem [shape: f32[2,8,39], index: 2, kind: input, shape index: {}]   ;;  %s361_s3 = inlined_call_operand.vmem [shape: f32[2,8], index: 3, kind: input, shape index: {}]   ;;  %s362_s5 = inlined_call_operand.vmem [shape: f32[1,2,1], index: 5, kind: output, shape index: {1}]   ;;  %s363_s4 = inlined_call_operand.vmem [shape: f32[1,2,1], index: 4, kind: output, shape index: {0}]  }
   0x1   :  { %v109_v0 = vld [vmem:[%s358_s0 + $0x20] sm:$0x7f]  ;;  %v108_v1 = vld [vmem:[%s358_s0 + $0x18] sm:$0xff]  ;;  %v107_v2 = vld [vmem:[%s358_s0 + $0x10] sm:$0xff]  ;;  %v276_v15 = vmov 0.0   ;;  %vm168_vm4 = vcmask 72704  }
   0x2   :  { %259 = vmatpush.msk.msra.mxu0 %vm117_vm0, %v109_v0  ;;  %262 = vmatpush.msk.msra.mxu1 %vm117_vm0, %v109_v0  ;;  %v97_v3 = vld [vmem:[%s359_s1] sm:$0xff]  ;;  %v98_v5 = vld [vmem:[%s359_s1 + $0x8] sm:$0xff]  ;;  %v181_v14 = vshrl.u32 %v180_v13, 7  ;;  %96 = vst.msk [vmem:[#allocation3] sm:$0x3] %vm94_vm2, %v276_v15  ;;  %v277_v45 = vmov 0  }
   0x3   :  { %v99_v4 = vld [vmem:[%s360_s2] sm:$0xff]  ;;  %v100_v6 = vld [vmem:[%s360_s2 + $0x8] sm:$0xff]  ;;  %95 = vst.msk [vmem:[#allocation2] sm:$0x3] %vm94_vm2, %v276_v15  ;;  %270 = vset.pattern.permute.xlu2 %v277_v45  ;;  %271 = vset.pattern.permute.xlu0 %v277_v45  ;;  %v206_v55 = vand.u32 127, %v180_v13  ;;  %vm209_vm8 = vcmask 1041409  }
   0x4   :  { %133 = vmatpush.msra.mxu0 %v108_v1  ;;  %263 = vmatpush.msra.mxu1 %v108_v1  ;;  %v101_v7 = vsub.f32 %v97_v3, %v99_v4  ;;  %v102_v8 = vsub.f32 %v98_v5, %v100_v6  ;;  %v106_v9 = vld [vmem:[%s358_s0 + $0x8] sm:$0xff]  ;;  %v105_v10 = vld [vmem:[%s358_s0] sm:$0xff]  ;;  %vm226_vm10 = vcmask 1024  }
   0x5   :  { %269 = vset.pattern.permute.xlu1 %v181_v14  ;;  %v340_v16 = vld [vmem:[%s361_s3] sm:$0x3] }
   0x6   :  { %134 = vmatpush.msra.mxu0 %v107_v2  ;;  %264 = vmatpush.msra.mxu1 %v107_v2  ;;  %v103_v11 = vmul.f32 %v101_v7, %v101_v7  ;;  %v104_v12 = vmul.f32 %v102_v8, %v102_v8  ;;  %v179_v17 = vperm.slane %v340_v16, 0  ;;  %v186_v20 = vperm.slane %v340_v16, 1 }
   0x7   :  { %vm177_vm9 = vcmp.ne.f32.partialorder %v340_v16, 0.0 }
   0x8   :  { %135 = vmatpush.msra.mxu0 %v106_v9  ;;  %265 = vmatpush.msra.mxu1 %v106_v9 }
   0x9   :  { %v216_v18 = vld [vmem:[#allocation3] sm:$0x3] }
   0xa   :  { %136 = vmatpush.msra.mxu0 %v105_v10  ;;  %266 = vmatpush.msra.mxu1 %v105_v10  ;;  %v217_v19 = vadd.f32 %v216_v18, %v340_v16  ;;  %v176_v59 = vld [vmem:[#allocation2] sm:$0x3] }
   0xb   :  { %260 = vmatmul.msk.f32.vlgmr.msra.gmra.mxu0 %vm110_vm1, %v103_v11  ;;  %261 = vmatmul.msk.f32.vlgmr.msra.gmra.mxu1 %vm110_vm1, %v104_v12 }
   0xc   :  { %218 = vst.msk [vmem:[#allocation3] sm:$0x3] %vm94_vm2, %v217_v19 }
   0xd   :  { %184 = vperm.xlu1 %269, %v179_v17  }
  0x13   :  { %v228_v52 = vld [vmem:[#allocation3] sm:$0x3] }
  0x14   :  { %v229_v53 = vsel %vm94_vm2, %v228_v52, 0.0 }
  0x15   :  { %191 = vperm.xlu1 %269, %v186_v20  }
  0x3f   :  { %230 = vadd.xlane.f32.xlu1 %v229_v53 }
  0x7f   :  { %v185_v46 = vpop.permute.xlu1 %184 }
  0x87   :  { %v192_v49 = vpop.permute.xlu1 %191 }
  0x88   :  { %v138_v21 = vpop.f32.mrf.mxu0  ;;  %v141_v22 = vpop.f32.mrf.mxu1 }
  0x89   :  { %272 = vrsqrt.f32 %v138_v21  ;;  %vm151_vm3 = vcmp.eq.f32.partialorder %v138_v21, inf  ;;  %v154_v36 = vand.u32 2147483648, %v138_v21  ;;  %vm153_vm5 = vcmp.eq.f32.partialorder %v138_v21, 0.0 }
  0x8a   :  { %274 = vrsqrt.f32 %v141_v22  ;;  %vm163_vm6 = vcmp.eq.f32.partialorder %v141_v22, inf  ;;  %v166_v42 = vand.u32 2147483648, %v141_v22  ;;  %vm165_vm7 = vcmp.eq.f32.partialorder %v141_v22, 0.0 }
  0x8f   :  { %v273_v23 = vpop.eup %272 }
  0x90   :  { %v275_v24 = vpop.eup %274  ;;  %v145_v25 = vmul.f32 %v273_v23, %v138_v21 }
  0x91   :  { %v157_v26 = vmul.f32 %v275_v24, %v141_v22 }
  0x92   :  { %v146_v27 = vmul.f32 %v273_v23, %v145_v25 }
  0x93   :  { %v158_v28 = vmul.f32 %v275_v24, %v157_v26 }
  0x94   :  { %v147_v29 = vmul.f32 0.5, %v146_v27 }
  0x95   :  { %v159_v30 = vmul.f32 0.5, %v158_v28 }
  0x96   :  { %v148_v31 = vsub.f32 1.5, %v147_v29 }
  0x97   :  { %v160_v32 = vsub.f32 1.5, %v159_v30 }
  0x98   :  { %v149_v33 = vmul.f32 %v273_v23, %v148_v31 }
  0x99   :  { %v161_v34 = vmul.f32 %v275_v24, %v160_v32 }
  0x9a   :  { %v150_v35 = vmul.f32 %v149_v33, %v138_v21 }
  0x9b   :  { %v162_v38 = vmul.f32 %v161_v34, %v141_v22 }
  0x9c   :  { %v152_v37 = vsel %vm151_vm3, %v138_v21, %v150_v35 }
  0x9d   :  { %v155_v39 = vsel %vm153_vm5, %v154_v36, %v152_v37  ;;  %v164_v41 = vsel %vm163_vm6, %v141_v22, %v162_v38 }
  0x9e   :  { %v169_v40 = vsel %vm168_vm4, %v155_v39, 0.0  ;;  %v167_v43 = vsel %vm165_vm7, %v166_v42, %v164_v41 }
  0x9f   :  { %170 = vadd.xlane.f32.xlu0 %v169_v40  ;;  %v172_v44 = vsel %vm168_vm4, %v167_v43, 0.0 }
  0xa7   :  { %173 = vadd.xlane.f32.xlu0 %v172_v44 }
  0xb2   :  { %v231_v1 = vpop.xlane.xlu1 %230 }
  0xb3   :  { %232 = vst.msk [vmem:[%s362_s5] sm:$0x3] %vm226_vm10, %v231_v1 }
 0x112   :  { %v171_v47 = vpop.xlane.xlu0 %170 }
 0x113   :  { %v195_v48 = vmul.f32 %v185_v46, %v171_v47 }
 0x115   :  { %200 = vperm.xlu2 %270, %v195_v48  }
 0x11a   :  { %v174_v50 = vpop.xlane.xlu0 %173 }
 0x11b   :  { %v196_v51 = vmul.f32 %v192_v49, %v174_v50 }
 0x11d   :  { %203 = vperm.xlu2 %270, %v196_v51  }
 0x16f   :  { %v201_v54 = vpop.permute.xlu2 %200 }
 0x170   :  { %v207_v57 = vperm.slane %v201_v54, %v206_v55 }
 0x177   :  { %v204_v56 = vpop.permute.xlu2 %203 }
 0x178   :  { %v208_v58 = vperm.slane %v204_v56, %v206_v55 }
 0x17a   :  { %v210_v60 = vsel %vm209_vm8, %v208_v58, %v207_v57 }
 0x17b   :  { %v212_v61 = vsel %vm177_vm9, %v210_v60, 0.0 }
 0x17c   :  { %v213_v62 = vadd.f32 %v212_v61, %v176_v59 }
 0x17e   :  { %215 = vst.msk [vmem:[#allocation2] sm:$0x3] %vm94_vm2, %v213_v62 }
 0x185   :  { %v222_v63 = vld [vmem:[#allocation2] sm:$0x3] }
 0x186   :  { %v223_v0 = vsel %vm94_vm2, %v222_v63, 0.0 }
 0x187   :  { %224 = vadd.xlane.f32.xlu0 %v223_v0 }
 0x1fa   :  { %v225_v2 = vpop.xlane.xlu0 %224 }
 0x1fb   :  { %227 = vst.msk [vmem:[%s363_s4] sm:$0x3] %vm226_vm10, %v225_v2 }

</bundles_post_ra>
